<compile_context>
chip_gen: v6e
topology: v6e:2x2x1
jax: 0.10.0
libtpu: 0.0.40
codegen_flags: <defaults>
</compile_context>

<pallas_src>
import jax
import jax.numpy as jnp
from jax.experimental import pallas as pl
from jax.experimental.pallas import tpu as pltpu

EMB = 64
MAX_USERS = 4


def _round_up(x: int, m: int) -> int:
    return (x + m - 1) // m * m


def _pick_tile_b(B: int) -> int:
    """Batch tile: big tiles for big batches (overhead-bound kernel), but keep
    at least 2 grid steps so both v7x TensorCores get work; small batches use
    one 16-row-aligned tile (bf16 sublane pack width)."""
    if B <= 512:
        return _round_up(B, 16)
    tile = min(2048, _round_up(B, 256))
    half = _round_up((B + 1) // 2, 256)      # >= 2 grid steps for v7x megacore
    return max(256, min(tile, half))


def _hypernet_kernel(rx_ref, w1_ref, b1_ref, w2_ref, b2_ref, wh_ref, bh_ref,
                     out_ref):
    # embedding1 = ReLU(rx @ W1 + b1)   (f32 matmul: K=16, negligible cost,
    # best parity with the PyTorch f32 reference)
    e1 = jnp.dot(rx_ref[...], w1_ref[...], preferred_element_type=jnp.float32)
    e1 = jnp.maximum(e1 + b1_ref[...], 0.0)
    # embedding2 = ReLU(e1 @ W2 + b2)   (bf16 MXU operands, f32 accumulate)
    e2 = jnp.dot(e1.astype(jnp.bfloat16), w2_ref[...],
                 preferred_element_type=jnp.float32)
    e2 = jnp.maximum(e2 + b2_ref[...], 0.0)
    # all heads at once: e2 @ [Wh_0 | Wh_1 | ...] + [bh_0 | bh_1 | ...]
    out = jnp.dot(e2.astype(jnp.bfloat16), wh_ref[...],
                  preferred_element_type=jnp.float32)
    out_ref[...] = (out + bh_ref[...]).astype(out_ref.dtype)


def hypernetwork_forward(rx, params, parameters_num, out_dtype=jnp.bfloat16):
    """rx: (B, MAX_USERS*input_size) float32. Returns list of (B, p_i) arrays
    of dtype `out_dtype` (bf16 by default; pass jnp.float32 for f32 outputs)."""
    w1, b1, w2, b2, wh, bh = params
    B, d_in = rx.shape
    p_pad = wh.shape[1]                      # already padded to a multiple of 128

    TILE_B = _pick_tile_b(B)
    B_pad = _round_up(B, TILE_B)
    if B_pad != B:
        rx = jnp.pad(rx, ((0, B_pad - B), (0, 0)))
    grid = (B_pad // TILE_B,)

    def resident(arr):
        n = arr.ndim
        return pl.BlockSpec(arr.shape, lambda b: (0,) * n)

    out = pl.pallas_call(
        _hypernet_kernel,
        out_shape=jax.ShapeDtypeStruct((B_pad, p_pad), out_dtype),
        grid_spec=pltpu.PrefetchScalarGridSpec(
            num_scalar_prefetch=0,
            grid=grid,
            in_specs=[
                pl.BlockSpec((TILE_B, d_in), lambda b: (b, 0)),  # rx tile (f32)
                resident(w1),    # W1  (d_in, EMB)      f32
                resident(b1),    # b1  (1, EMB)         f32
                resident(w2),    # W2  (EMB, EMB//2)    bf16
                resident(b2),    # b2  (1, EMB//2)      f32
                resident(wh),    # Wh  (EMB//2, p_pad)  bf16
                resident(bh),    # bh  (1, p_pad)       f32
            ],
            out_specs=pl.BlockSpec((TILE_B, p_pad), lambda b: (b, 0)),
        ),
        compiler_params=pltpu.CompilerParams(
            dimension_semantics=("parallel",)),
    )(rx, w1, b1, w2, b2, wh, bh)

    # Split concatenated (and lane-padded) head outputs back into the per-head
    # list; this also drops the batch / lane padding (pure glue).
    fc_weights = []
    off = 0
    for p in parameters_num:
        fc_weights.append(out[:B, off:off + p])
        off += p
    return fc_weights


def init_params(key, input_size, parameters_num):
    """Deterministic parameter init. Weights stored as (in, out).  The bf16
    copies used by the kernel (W2, Wh) are created here ONCE so the forward
    pass does not re-cast weights every call.  The concatenated head
    weight/bias are zero-padded to a multiple of 128 output lanes so the
    kernel output is lane-dense."""
    d_in = MAX_USERS * input_size
    ks = jax.random.split(key, 4 + 2 * len(parameters_num))
    scale = 0.05
    w1 = scale * jax.random.normal(ks[0], (d_in, EMB), jnp.float32)
    b1 = scale * jax.random.normal(ks[1], (1, EMB), jnp.float32)
    w2 = scale * jax.random.normal(ks[2], (EMB, EMB // 2), jnp.float32)
    b2 = scale * jax.random.normal(ks[3], (1, EMB // 2), jnp.float32)
    whs, bhs = [], []
    for i, p in enumerate(parameters_num):
        whs.append(scale * jax.random.normal(ks[4 + 2 * i], (EMB // 2, p),
                                             jnp.float32))
        bhs.append(scale * jax.random.normal(ks[5 + 2 * i], (1, p),
                                             jnp.float32))
    wh = jnp.concatenate(whs, axis=1)
    bh = jnp.concatenate(bhs, axis=1)
    p_total = wh.shape[1]
    p_pad = _round_up(p_total, 128)          # lane-dense output width
    if p_pad != p_total:
        wh = jnp.pad(wh, ((0, 0), (0, p_pad - p_total)))
        bh = jnp.pad(bh, ((0, 0), (0, p_pad - p_total)))
    # hoisted bf16 copies for the MXU operands (W1 kept f32 for the K=16 matmul)
    w2_bf = w2.astype(jnp.bfloat16)
    wh_bf = wh.astype(jnp.bfloat16)
    return (w1, b1, w2_bf, b2, wh_bf, bh)


def reference_forward(rx, params, parameters_num):
    """Pure-JAX f32 reference mirroring the PyTorch module (same weights)."""
    w1, b1, w2, b2, wh, bh = params
    e1 = jnp.maximum(rx @ w1 + b1, 0.0)
    e2 = jnp.maximum(e1 @ w2.astype(jnp.float32) + b2, 0.0)
    out = e2 @ wh.astype(jnp.float32) + bh
    res, off = [], 0
    for p in parameters_num:
        res.append(out[:, off:off + p])
        off += p
    return res


if __name__ == "__main__":
    key = jax.random.PRNGKey(0)
    input_size = 4                      # rx has MAX_USERS*input_size = 16 features
    parameters_num = [8, 16, 24]        # sizes of the generated weight vectors
    batch = 2

    k_in, k_par = jax.random.split(key)
    rx = jax.random.normal(k_in, (batch, MAX_USERS * input_size), jnp.float32)
    params = init_params(k_par, input_size, parameters_num)

    outs = hypernetwork_forward(rx, params, parameters_num)
    outs = [jax.block_until_ready(o) for o in outs]

    refs = reference_forward(rx, params, parameters_num)
    for o, r, p in zip(outs, refs, parameters_num):
        assert o.shape == (batch, p), (o.shape, p)
        # bf16 MXU operands / bf16 output with f32 accumulation -> small
        # rounding vs the f32 reference
        assert jnp.allclose(o.astype(jnp.float32), r, atol=2e-2, rtol=2e-2), \
            "mismatch vs reference"

    print("KERNEL_OK")
</pallas_src>

<mosaic_0001>
module attributes {stable_mosaic.version = 11 : i64} {
  func.func @_hypernet_kernel(%arg0: i32, %arg1: memref<16x16xf32, #tpu.memory_space<vmem>>, %arg2: memref<16x64xf32, #tpu.memory_space<vmem>>, %arg3: memref<1x64xf32, #tpu.memory_space<vmem>>, %arg4: memref<64x32xbf16, #tpu.memory_space<vmem>>, %arg5: memref<1x32xf32, #tpu.memory_space<vmem>>, %arg6: memref<32x128xbf16, #tpu.memory_space<vmem>>, %arg7: memref<1x128xf32, #tpu.memory_space<vmem>>, %arg8: memref<16x128xbf16, #tpu.memory_space<vmem>>) attributes {dimension_semantics = [#tpu.dimension_semantics<parallel>], iteration_bounds = array<i64: 1>, scalar_prefetch = 0 : i64, scratch_operands = 0 : i64, tpu.core_type = #tpu.core_type<tc>, window_params = [{transform_indices = @transform_0, window_bounds = array<i64: 16, 16>}, {pipeline_mode = #tpu.pipeline_mode<synchronous>, transform_indices = @transform_1, window_bounds = array<i64: 16, 64>}, {pipeline_mode = #tpu.pipeline_mode<synchronous>, transform_indices = @transform_2, window_bounds = array<i64: 1, 64>}, {pipeline_mode = #tpu.pipeline_mode<synchronous>, transform_indices = @transform_3, window_bounds = array<i64: 64, 32>}, {pipeline_mode = #tpu.pipeline_mode<synchronous>, transform_indices = @transform_4, window_bounds = array<i64: 1, 32>}, {pipeline_mode = #tpu.pipeline_mode<synchronous>, transform_indices = @transform_5, window_bounds = array<i64: 32, 128>}, {pipeline_mode = #tpu.pipeline_mode<synchronous>, transform_indices = @transform_6, window_bounds = array<i64: 1, 128>}, {transform_indices = @transform_7, window_bounds = array<i64: 16, 128>}]} {
    %c0 = arith.constant 0 : index
    %c0_0 = arith.constant 0 : index
    %0 = vector.load %arg1[%c0, %c0_0] : memref<16x16xf32, #tpu.memory_space<vmem>>, vector<16x16xf32>
    %c0_1 = arith.constant 0 : index
    %c0_2 = arith.constant 0 : index
    %1 = vector.load %arg2[%c0_1, %c0_2] : memref<16x64xf32, #tpu.memory_space<vmem>>, vector<16x64xf32>
    %cst = arith.constant dense<0.000000e+00> : vector<16x64xf32>
    %2 = tpu.matmul %0, %1, %cst {dimension_numbers = #tpu.dot_dimension_numbers<[1], [0], [0], [1], [0, 0, 1, 1], [], []>} : vector<16x16xf32>, vector<16x64xf32>, vector<16x64xf32> -> vector<16x64xf32>
    %c0_3 = arith.constant 0 : index
    %c0_4 = arith.constant 0 : index
    %3 = vector.load %arg3[%c0_3, %c0_4] : memref<1x64xf32, #tpu.memory_space<vmem>>, vector<1x64xf32>
    %4 = vector.broadcast %3 : vector<1x64xf32> to vector<16x64xf32>
    %5 = arith.addf %2, %4 : vector<16x64xf32>
    %cst_5 = arith.constant 0.000000e+00 : f32
    %6 = vector.broadcast %cst_5 : f32 to vector<16x64xf32>
    %7 = arith.maximumf %5, %6 : vector<16x64xf32>
    %8 = arith.truncf %7 : vector<16x64xf32> to vector<16x64xbf16>
    %c0_6 = arith.constant 0 : index
    %c0_7 = arith.constant 0 : index
    %9 = vector.load %arg4[%c0_6, %c0_7] : memref<64x32xbf16, #tpu.memory_space<vmem>>, vector<64x32xbf16>
    %cst_8 = arith.constant dense<0.000000e+00> : vector<16x32xf32>
    %10 = tpu.matmul %8, %9, %cst_8 {dimension_numbers = #tpu.dot_dimension_numbers<[1], [0], [0], [1], [0, 0, 1, 1], [], []>} : vector<16x64xbf16>, vector<64x32xbf16>, vector<16x32xf32> -> vector<16x32xf32>
    %c0_9 = arith.constant 0 : index
    %c0_10 = arith.constant 0 : index
    %11 = vector.load %arg5[%c0_9, %c0_10] : memref<1x32xf32, #tpu.memory_space<vmem>>, vector<1x32xf32>
    %12 = vector.broadcast %11 : vector<1x32xf32> to vector<16x32xf32>
    %13 = arith.addf %10, %12 : vector<16x32xf32>
    %cst_11 = arith.constant 0.000000e+00 : f32
    %14 = vector.broadcast %cst_11 : f32 to vector<16x32xf32>
    %15 = arith.maximumf %13, %14 : vector<16x32xf32>
    %16 = arith.truncf %15 : vector<16x32xf32> to vector<16x32xbf16>
    %c0_12 = arith.constant 0 : index
    %c0_13 = arith.constant 0 : index
    %17 = vector.load %arg6[%c0_12, %c0_13] : memref<32x128xbf16, #tpu.memory_space<vmem>>, vector<32x128xbf16>
    %cst_14 = arith.constant dense<0.000000e+00> : vector<16x128xf32>
    %18 = tpu.matmul %16, %17, %cst_14 {dimension_numbers = #tpu.dot_dimension_numbers<[1], [0], [0], [1], [0, 0, 1, 1], [], []>} : vector<16x32xbf16>, vector<32x128xbf16>, vector<16x128xf32> -> vector<16x128xf32>
    %c0_15 = arith.constant 0 : index
    %c0_16 = arith.constant 0 : index
    %19 = vector.load %arg7[%c0_15, %c0_16] : memref<1x128xf32, #tpu.memory_space<vmem>>, vector<1x128xf32>
    %20 = vector.broadcast %19 : vector<1x128xf32> to vector<16x128xf32>
    %21 = arith.addf %18, %20 : vector<16x128xf32>
    %22 = arith.truncf %21 : vector<16x128xf32> to vector<16x128xbf16>
    %c0_17 = arith.constant 0 : index
    %c0_18 = arith.constant 0 : index
    %23 = vector.load %arg8[%c0_17, %c0_18] : memref<16x128xbf16, #tpu.memory_space<vmem>>, vector<16x128xbf16>
    tpu.vector_store %arg8[%c0_17, %c0_18], %22 {strides = array<i32>} : memref<16x128xbf16, #tpu.memory_space<vmem>>, vector<16x128xbf16>,
    return
  }
  func.func @transform_0(%arg0: i32) -> (i32, i32) {
    %c0_i32 = arith.constant 0 : i32
    %c0_i32_0 = arith.constant 0 : i32
    return %arg0, %c0_i32 : i32, i32
  }
  func.func @transform_1(%arg0: i32) -> (i32, i32) {
    %c0_i32 = arith.constant 0 : i32
    %c0_i32_0 = arith.constant 0 : i32
    %c0_i32_1 = arith.constant 0 : i32
    return %c0_i32, %c0_i32_0 : i32, i32
  }
  func.func @transform_2(%arg0: i32) -> (i32, i32) {
    %c0_i32 = arith.constant 0 : i32
    %c0_i32_0 = arith.constant 0 : i32
    %c0_i32_1 = arith.constant 0 : i32
    return %c0_i32, %c0_i32_0 : i32, i32
  }
  func.func @transform_3(%arg0: i32) -> (i32, i32) {
    %c0_i32 = arith.constant 0 : i32
    %c0_i32_0 = arith.constant 0 : i32
    %c0_i32_1 = arith.constant 0 : i32
    return %c0_i32, %c0_i32_0 : i32, i32
  }
  func.func @transform_4(%arg0: i32) -> (i32, i32) {
    %c0_i32 = arith.constant 0 : i32
    %c0_i32_0 = arith.constant 0 : i32
    %c0_i32_1 = arith.constant 0 : i32
    return %c0_i32, %c0_i32_0 : i32, i32
  }
  func.func @transform_5(%arg0: i32) -> (i32, i32) {
    %c0_i32 = arith.constant 0 : i32
    %c0_i32_0 = arith.constant 0 : i32
    %c0_i32_1 = arith.constant 0 : i32
    return %c0_i32, %c0_i32_0 : i32, i32
  }
  func.func @transform_6(%arg0: i32) -> (i32, i32) {
    %c0_i32 = arith.constant 0 : i32
    %c0_i32_0 = arith.constant 0 : i32
    %c0_i32_1 = arith.constant 0 : i32
    return %c0_i32, %c0_i32_0 : i32, i32
  }
  func.func @transform_7(%arg0: i32) -> (i32, i32) {
    %c0_i32 = arith.constant 0 : i32
    %c0_i32_0 = arith.constant 0 : i32
    return %arg0, %c0_i32 : i32, i32
  }
}

</mosaic_0001>

<bundles_post_ra>
// kernel: tpu_custom_call.1
= control target key start
LH: loop header
LB: loop body
LE: loop exit
PB: predicated region body
PF: predicated region fallthrough
CT: control target
= control target key end

     0   :  { %vm39_vm0 = vcmask 130048   ;;  %v399_v4 = vmov 0.0   ;;  %s486_s0 = inlined_call_operand.vmem [shape: f32[16,16], index: 0, kind: input, shape index: {}]   ;;  %s487_s1 = inlined_call_operand.vmem [shape: f32[16,64], index: 1, kind: input, shape index: {}]   ;;  %s488_s2 = inlined_call_operand.vmem [shape: f32[1,64], index: 2, kind: input, shape index: {}]   ;;  %s489_s3 = inlined_call_operand.vmem [shape: bf16[64,32], index: 3, kind: input, shape index: {}]   ;;  %s490_s4 = inlined_call_operand.vmem [shape: f32[1,32], index: 4, kind: input, shape index: {}]   ;;  %s491_s5 = inlined_call_operand.vmem [shape: bf16[32,128], index: 5, kind: input, shape index: {}]   ;;  %s492_s6 = inlined_call_operand.vmem [shape: f32[1,128], index: 6, kind: input, shape index: {}]   ;;  %s493_s7 = inlined_call_operand.hbm [shape: bf16[16,128], index: 7, kind: output, shape index: {}]  }
   0x1   :  { %v31_v0 = vld [vmem:[%s487_s1 + $0x8] sm:$0xff]  ;;  %v30_v1 = vld [vmem:[%s487_s1] sm:$0xff]  ;;  %346 = vmatprep.subr.bf16.mxu1 %v399_v4  ;;  %v371_v5 = vld [vmem:[%s489_s3 + $0x18] sm:$0xff]  }
   0x2   :  { %v28_v2 = vld [vmem:[%s486_s0] sm:$0xff]  ;;  %339 = vmatprep.subr.mxu0 %v31_v0  ;;  %v29_v3 = vld [vmem:[%s486_s0 + $0x8] sm:$0xff]  ;;  %v372_v6 = vld [vmem:[%s489_s3 + $0x10] sm:$0xff]   ;;  %347 = vmatpush3.bf16.msra.mxu1 %v371_v5 }
   0x3   :  { %343 = vmatprep.mubr.msk.f32.mxu0 %vm39_vm0, %v28_v2  ;;  %340 = vmatpush3.msra.mxu0 %v31_v0 }
   0x4   :  { %341 = vmatprep.subr.mxu0 %v30_v1  ;;  %348 = vmatprep.subr.bf16.mxu1 %v399_v4 }
   0x5   :  { %342 = vmatpush3.msra.mxu0 %v30_v1 }
   0x6   :  { %344 = vmatmul.mubr.msk.f32.vlgmr.msra.gmra.mxu0 %vm39_vm0, %v29_v3  ;;  %358 = vmatprep.subr.bf16.mxu0 %v399_v4 }
   0x7   :  { %12 = vsyncpa [#allocation3], 0  ;;  %349 = vmatpush3.bf16.msra.mxu1 %v372_v6  ;;  %v373_v7 = vld [vmem:[%s489_s3 + $0x8] sm:$0xff]   ;;  %v374_v8 = vld [vmem:[%s489_s3] sm:$0xff]   ;;  %vm400_vm1 = vmmov 0   ;;  %vm163_vm2 = vcmask 523264  }
   0x8   :  { %350 = vmatprep.subr.bf16.mxu1 %v399_v4  ;;  %354 = vmatprep.mubr.msk.bf16.mxu1 %vm400_vm1, %v399_v4  ;;  %v305_v9 = vld [vmem:[%s488_s2] ss:$0 sm:$0xff]  ;;  %v375_v17 = vld [vmem:[%s491_s5 + $0x8] sm:$0xff]   ;;  %vm234_vm3 = vcmask 261120  }
   0x9   :  { %362 = vmatprep.mubr.msk.bf16.mxu0 %vm400_vm1, %v399_v4  ;;  %359 = vmatpush3.bf16.msra.mxu0 %v375_v17  ;;  %v376_v18 = vld [vmem:[%s491_s5] sm:$0xff]   ;;  %s401_s5 = smov [#allocation2]  }
   0xa   :  { %360 = vmatprep.subr.bf16.mxu0 %v399_v4  ;;  %v308_v19 = vld [vmem:[%s490_s4] ss:$0 sm:$0xff]  ;;  %s294_s23 = sshll.u32 %s401_s5, 4  ;;  %s295_s23 = int_to_ptr.vmem [resolvable:$true] %s294_s23 }
   0xb   :  { %351 = vmatpush3.bf16.msra.mxu1 %v373_v7  ;;  %v314_v30 = vld [vmem:[%s492_s6] ss:$0 sm:$0xff]  ;;  %s377_s4 = scalar_lea.vmem %s295_s23, 128  ;;  %p382_p1 = scmp.lt.s32.totalorder %s295_s23, %s295_s23 }
   0xc   :  { %352 = vmatprep.subr.bf16.mxu1 %v399_v4  ;;  %p378_p0 = scmp.ne.s32.totalorder %s295_s23, %s377_s4  ;;  %p383_p2 = scmp.lt.s32.totalorder %s377_s4, %s377_s4 }
   0xd   :  { %361 = vmatpush3.bf16.msra.mxu0 %v376_v18 }
   0xe   :  { %p384_p3 = por %p383_p2, %p382_p1 }
   0xf   :  { %353 = vmatpush3.bf16.msra.mxu1 %v374_v8 }
  0x10   :  { %p385_p4 = pnand %p384_p3, %p378_p0 }
  0xc6   :  { %v345_v10 = vpop.f32.mrf.mxu0 }
  0xc7   :  { %v118_v11 = vadd.f32 %v345_v10, %v305_v9 }
  0xc8   :  { %v112_v12 = vpop.f32.mrf.mxu0 }
  0xc9   :  { %v113_v13 = vadd.f32 %v305_v9, %v112_v12  ;;  %v122_v14 = vmax.f32 %v118_v11, 0.0 }
  0xcb   :  { %v121_v15 = vmax.f32 %v113_v13, 0.0 }
  0xcd   :  { %v123_v16 = vpack.c.bf16 %v122_v14, %v121_v15 }
  0xcf   :  { %355 = vmatmul.mubr.msk.bf16.vlgmr.msra.gmra.mxu1 %vm163_vm2, %v123_v16 }
 0x18f   :  { %v201_v20 = vpop.f32.mrf.mxu1 }
 0x190   :  { %v202_v22 = vadd.f32 %v308_v19, %v201_v20 }
 0x191   :  { %v356_v21 = vpop.f32.mrf.mxu1 }
 0x192   :  { %v208_v26 = vmax.f32 %v202_v22, 0.0 }
 0x193   :  { %v204_v23 = vpop.f32.mrf.mxu1 }
 0x194   :  { %v205_v24 = vadd.f32 %v308_v19, %v204_v23 }
 0x195   :  { %v357_v25 = vpop.f32.mrf.mxu1 }
 0x196   :  { %v209_v27 = vmax.f32 %v205_v24, 0.0 }
 0x198   :  { %v210_v28 = vpack.c.bf16 %v209_v27, %v208_v26 }
 0x19a   :  { %363 = vmatmul.mubr.msk.bf16.vlgmr.msra.gmra.mxu0 %vm234_vm3, %v210_v28 }
 0x25a   :  { %v272_v29 = vpop.f32.mrf.mxu0 }
 0x25b   :  { %v273_v33 = vadd.f32 %v314_v30, %v272_v29 }
 0x25c   :  { %v364_v31 = vpop.f32.mrf.mxu0 }
 0x25e   :  { %v275_v32 = vpop.f32.mrf.mxu0 }
 0x25f   :  { %v276_v34 = vadd.f32 %v314_v30, %v275_v32 }
 0x260   :  { %v365_v35 = vpop.f32.mrf.mxu0 }
 0x261   :  { %v325_v36 = vpack.c.bf16 %v276_v34, %v273_v33 }
 0x263   :  { %326 = vst [vmem:[#allocation2] sm:$0xff] %v325_v36  }
 0x264   :  { %388 = shalt.err (!%p385_p4)
}
 0x265   :  { %s402_s24 = smov 64   ;;  %s403_s25 = smov 4  }
 0x266   :  { %300 = dma.vmem_to_hbm [thread:$0]  %s295_s23, 128, %s493_s7, [#allocation3], %s402_s24, %s402_s24, %s403_s25  }
 0x267   :  { %397 = dma.done.wait [#allocation3], 128  }
 0x268   :  { %398 = vsyncadd [#allocation3], 4294967168 }
 0x269   :  { %304 = vsyncpa [#allocation3], 1 }

</bundles_post_ra>
